<compile_context>
chip_gen: v6e
topology: v6e:2x2x1
jax: 0.10.0
libtpu: 0.0.40
codegen_flags: <defaults>
</compile_context>

<pallas_src>
import numpy as np
import jax
import jax.numpy as jnp
from jax.experimental import pallas as pl
from jax.experimental.pallas import tpu as pltpu

# ---------------- static configuration (small shapes) ----------------
B = 2            # batch size
F = 8            # node features
TD = 1           # time-encoding dim
H = 32           # MLP hidden dim
S = 2            # space dim
V = 3            # vertices per triangle
NX = NY = 4      # structured mesh nodes per side
NN = NX * NY     # number of nodes = 16
C = 2 * (NX - 1) * (NY - 1)     # number of cells = 18
DIN = TD + S + V * S + V * F    # cell-feature dim = 33
DIN_PAD = 128                   # lane-pad the MLP input (exactly one MXU pass on v5e)
NR = B * C * V                  # rows = (batch, cell, receiving vertex) = 108
NRP = 128                       # padded row count -> single grid step
LK = V * S * F + V * F          # message-product lane width = 48 (conv) + 24 (free-form) = 72
OUT_ROWS = 8                    # padded batch rows for a full-vreg lane-dense output store
WP_ROWS = 352                   # bf16 weight/matrix pack rows
CP_ROWS = 136                   # f32 constant pack rows
CP_LANES = 128 + LK             # f32 constant pack lanes: [mask(128) | conv/ff data(72)]


# ---------------- synthetic FEM domain assembly (NumPy glue) ----------------
def build_domain():
    xs = np.linspace(0.0, 1.0, NX)
    ys = np.linspace(0.0, 1.0, NY)
    node_pos = np.stack(np.meshgrid(xs, ys, indexing="xy"), axis=-1).reshape(-1, 2)

    tris = []
    for iy in range(NY - 1):
        for ix in range(NX - 1):
            n00 = iy * NX + ix
            n10 = n00 + 1
            n01 = n00 + NX
            n11 = n01 + 1
            tris.append((n00, n10, n11))   # CCW
            tris.append((n00, n11, n01))   # CCW
    T = np.array(tris, dtype=np.int64)                         # (C, V)

    p = node_pos[T]                                            # (C, V, S)
    centers = p.mean(axis=1)                                   # (C, S)
    local_pos = p - centers[:, None, :]                        # (C, V, S)

    x0, y0 = p[:, 0, 0], p[:, 0, 1]
    x1, y1 = p[:, 1, 0], p[:, 1, 1]
    x2, y2 = p[:, 2, 0], p[:, 2, 1]
    area = 0.5 * ((x1 - x0) * (y2 - y0) - (x2 - x0) * (y1 - y0))   # positive (CCW)

    # P1 basis-function gradients (constant per cell), grads[c, j, s]
    grads = np.zeros((C, V, S))
    grads[:, 0, 0] = (y1 - y2) / (2 * area)
    grads[:, 0, 1] = (x2 - x1) / (2 * area)
    grads[:, 1, 0] = (y2 - y0) / (2 * area)
    grads[:, 1, 1] = (x0 - x2) / (2 * area)
    grads[:, 2, 0] = (y0 - y1) / (2 * area)
    grads[:, 2, 1] = (x1 - x0) / (2 * area)

    # lumped mass matrix diagonal: each vertex of a cell receives area/3
    lumped = np.zeros(NN)
    np.add.at(lumped, T.reshape(-1), np.repeat(area / 3.0, V))
    inv_lumped = 1.0 / lumped                                   # (NN,)

    # free-form parts: data[v, c] = \int phi_v dx = area/3
    ff_data = np.broadcast_to((area / 3.0)[None, :], (V, C)).copy()          # (V, C)

    # convection parts: data[j, i, c, s] = -\int d(phi_j)/dx_s * phi_i dx = -grads[c,j,s]*area/3
    conv_data = -np.einsum("cjs,c->jcs", grads, area / 3.0)[:, None, :, :]   # (V, 1, C, S)
    conv_data = np.broadcast_to(conv_data, (V, V, C, S)).copy()              # (V, V, C, S)

    # TODO(synk): fixed_values_mask is left as None (optional boundary-condition masking).
    return dict(
        T=T, centers=centers.astype(np.float32), local_pos=local_pos.astype(np.float32),
        inv_lumped=inv_lumped.astype(np.float32), ff_data=ff_data.astype(np.float32),
        conv_data=conv_data.astype(np.float32),
    )


# ---------------- deterministic parameter init ----------------
# MLP structure: Linear(in,H) -> tanh -> Linear(H,H) -> tanh -> Linear(H,out); zero_init=False.
def init_linear(key, din, dout):
    kw, kb = jax.random.split(key)
    w = (jax.random.normal(kw, (din, dout), jnp.float32) / np.sqrt(din)).astype(jnp.float32)
    b = (0.1 * jax.random.normal(kb, (1, dout), jnp.float32)).astype(jnp.float32)
    return w, b


def init_params(key):
    ks = jax.random.split(key, 6)
    w1f, b1f = init_linear(ks[0], DIN, H)      # FreeFormTerm coefficient MLP: DIN -> H -> H -> V*F
    w2f, b2f = init_linear(ks[1], H, H)
    wcf, bcf = init_linear(ks[2], H, V * F)
    w1t, b1t = init_linear(ks[3], DIN, H)      # TransportTerm flow-field MLP: DIN -> H -> H -> F*S
    w2t, b2t = init_linear(ks[4], H, H)
    wft, bft = init_linear(ks[5], H, F * S)
    return dict(w1f=w1f, b1f=b1f, w2f=w2f, b2f=b2f, wcf=wcf, bcf=bcf,
                w1t=w1t, b1t=b1t, w2t=w2t, b2t=b2t, wft=wft, bft=bft)


# ---------------- single fused Pallas kernel ----------------
# Row = (batch, cell, receiving vertex i), padded 108 -> 128.  One grid step does:
#   fused 2-head MLP (bf16 MXU, f32 acc) -> head (flow tiled over j | coeff) ->
#   full-width message products (f32 VPU) -> 0/1 bf16 MXU reduce to node-tiled features ->
#   scatter mask (with inverse lumped mass folded) -> batch-reduce matmul -> one (8,128) store.
def fen_fused_kernel(feat_ref, dyn_ref, cpack_ref, wpack_ref, out_ref):
    x = feat_ref[...]                                    # (128, 128) bf16

    # packed weights / matrices (static, aligned slices)
    w1 = wpack_ref[0:128, 0:2 * H]                       # (128, 64) bf16
    w2 = wpack_ref[128:192, 0:2 * H]                     # (64, 64)  bf16  blockdiag
    w3 = wpack_ref[192:256, 0:LK]                        # (64, 72)  bf16  [flow x V | coeff]
    lm = wpack_ref[256:256 + OUT_ROWS, :]                # (8, 128)  bf16  batch selectors
    r2 = wpack_ref[272:272 + LK, :]                      # (72, 128) bf16  lane-group reduce + node tile
    mask = cpack_ref[0:NRP, 0:NN * F]                    # (128, 128) f32  scatter * inv lumped mass
    cst = cpack_ref[0:NRP, 128:128 + LK]                 # (128, 72)  f32  conv data | ff*(i'==i)
    b2 = cpack_ref[128:129, 0:2 * H]                     # (1, 64) f32
    b3 = cpack_ref[128:129, 128:128 + LK]                # (1, 72) f32

    # fused two-head MLP (Eq. 16 + Eq. 20); layer-1 biases folded into x's constant-1 lane
    h = jnp.tanh(jnp.dot(x, w1, preferred_element_type=jnp.float32))
    g = jnp.tanh(jnp.dot(h.astype(jnp.bfloat16), w2,
                         preferred_element_type=jnp.float32) + b2)
    head = jnp.dot(g.astype(jnp.bfloat16), w3,
                   preferred_element_type=jnp.float32) + b3          # (128, 72) f32

    # message products (Eq. 17 + Eq. 21): two full-width f32 VPU multiplies, no lane slicing
    prod = head * cst * dyn_ref[...]                                  # (128, 72) f32

    # reduce (j, s) / select i and tile over nodes, then scatter + batch reduce (Eq. 14)
    red = jnp.dot(prod.astype(jnp.bfloat16), r2,
                  preferred_element_type=jnp.float32)                 # (128, 128) f32
    masked = red * mask                                               # (128, 128) f32
    out_ref[...] = jnp.dot(lm, masked.astype(jnp.bfloat16),
                           preferred_element_type=jnp.float32)        # (8, 128) lane-dense store


# ---------------- one-time constant preparation (hoisted out of the hot path) ----------------
def prepare(params, dom):
    T = dom["T"]                                                      # (C, V) numpy int
    perm = np.array([f * S + s for s in range(S) for f in range(F)])  # (f s) -> (s f)

    # ----- bf16 weight / 0-1 matrix pack -----
    wpack = jnp.zeros((WP_ROWS, 128), jnp.float32)
    wpack = wpack.at[:DIN, 0:H].set(params["w1f"]).at[DIN, 0:H].set(params["b1f"][0])
    wpack = wpack.at[:DIN, H:2 * H].set(params["w1t"]).at[DIN, H:2 * H].set(params["b1t"][0])
    wpack = wpack.at[128:128 + H, 0:H].set(params["w2f"])
    wpack = wpack.at[128 + H:128 + 2 * H, H:2 * H].set(params["w2t"])
    # head: flow columns permuted to (s f) and replicated V times (tiled over trial vertex j)
    wpack = wpack.at[192 + H:192 + 2 * H, 0:V * S * F].set(
        jnp.tile(params["wft"][:, perm], (1, V)))
    wpack = wpack.at[192:192 + H, V * S * F:LK].set(params["wcf"])
    # batch-selector matrix (rows >= B and padded row columns stay zero)
    l_np = np.zeros((OUT_ROWS, 128), np.float32)
    for b in range(B):
        l_np[b, b * C * V:(b + 1) * C * V] = 1.0
    wpack = wpack.at[256:256 + OUT_ROWS, :].set(jnp.asarray(l_np))
    # lane-group reduction matrix: R2[k, n*F + f] = [k % F == f]  (also tiles messages over nodes)
    r2_np = np.zeros((LK, NN * F), np.float32)
    for k in range(LK):
        r2_np[k, (k % F)::F] = 1.0
    wpack = wpack.at[272:272 + LK, :].set(jnp.asarray(r2_np))
    wpack = wpack.astype(jnp.bfloat16)

    # ----- f32 constant pack: [scatter mask * inv lumped mass | conv/ff data] + bias row -----
    invL = dom["inv_lumped"]
    conv = dom["conv_data"]                                           # (V_j, V_i, C, S)
    ff = dom["ff_data"]                                               # (V, C)
    cnp = np.zeros((CP_ROWS, CP_LANES), np.float32)
    for b in range(B):
        for c in range(C):
            for i in range(V):
                r = (b * C + c) * V + i
                n = int(T[c, i])
                cnp[r, n * F:(n + 1) * F] = invL[n]                   # scatter + mass scaling
                for j in range(V):
                    for s in range(S):
                        k0 = 128 + (j * S + s) * F
                        cnp[r, k0:k0 + F] = conv[j, i, c, s]          # convection data
                k0 = 128 + V * S * F + i * F
                cnp[r, k0:k0 + F] = ff[i, c]                          # free-form data (i'==i only)
    cpack = jnp.asarray(cnp)
    cpack = cpack.at[128, 0:2 * H].set(jnp.concatenate([params["b2f"][0], params["b2t"][0]]))
    cpack = cpack.at[128, 128:128 + V * S * F].set(jnp.tile(params["bft"][:, perm], (1, V))[0])
    cpack = cpack.at[128, 128 + V * S * F:128 + LK].set(params["bcf"][0])

    return dict(wpack=wpack, cpack=cpack,
                T=jnp.asarray(T.astype(np.int32)),
                centers=jnp.asarray(dom["centers"]),
                local_pos=jnp.asarray(dom["local_pos"].reshape(C, V * S)))


# ---------------- per-step wrapper (WithDomain.forward equivalent), fully jitted ----------------
@jax.jit
def with_domain_forward(t, u, consts):
    T = consts["T"]
    u_cells = u[:, T]                                                 # (B, C, V, F)

    # cell features: [time, cell_pos, local vertex pos, vertex features], replicated per vertex i
    feats = jnp.concatenate([
        jnp.broadcast_to(t[:, None, :], (B, C, TD)),
        jnp.broadcast_to(consts["centers"][None], (B, C, S)),
        jnp.broadcast_to(consts["local_pos"][None], (B, C, V * S)),
        u_cells.reshape(B, C, V * F),
    ], axis=-1)                                                       # (B, C, DIN)
    feats_rows = jnp.broadcast_to(feats[:, :, None, :], (B, C, V, DIN)).reshape(NR, DIN)
    feat_p = jnp.zeros((NRP, DIN_PAD), jnp.float32)
    feat_p = feat_p.at[:NR, :DIN].set(feats_rows)
    feat_p = feat_p.at[:, DIN].set(1.0)                               # constant-1 bias lane
    feat_p = feat_p.astype(jnp.bfloat16)

    # dynamic message slab: u at trial vertex j tiled over s (48 lanes) | ones (24 coeff lanes)
    uc_tiled = jnp.broadcast_to(u_cells[:, :, None, :, None, :],
                                (B, C, V, V, S, F)).reshape(NR, V * S * F)
    dyn = jnp.zeros((NRP, LK), jnp.float32)
    dyn = dyn.at[:NR, :V * S * F].set(uc_tiled)
    dyn = dyn.at[:NR, V * S * F:].set(1.0)

    full = lambda shp: pl.BlockSpec(shp, lambda i: (0, 0))
    out = pl.pallas_call(
        fen_fused_kernel,
        out_shape=jax.ShapeDtypeStruct((OUT_ROWS, NN * F), jnp.float32),
        grid=(1,),                                      # single grid step — no per-step overhead
        in_specs=[full((NRP, DIN_PAD)),                 # features (bf16, per call)
                  full((NRP, LK)),                      # dynamic u slab (f32, per call)
                  full((CP_ROWS, CP_LANES)),            # f32 constants: mask | data | biases
                  full((WP_ROWS, 128))],                # bf16 weights + reduction/selector matrices
        out_specs=full((OUT_ROWS, NN * F)),
        compiler_params=pltpu.CompilerParams(dimension_semantics=("arbitrary",)),
    )(feat_p, dyn, consts["cpack"], consts["wpack"])

    # TODO(synk): fixed_values_mask is None for this synthetic domain -> no boundary masking step.
    # TODO(synk): at larger B/mesh sizes, add a leading 'parallel' row-block grid axis for v7x.
    return out[:B].reshape(B, NN, F)


# ---------------- pure-JAX reference (mirrors the kernel's bf16 rounding points) ----------------
def _rb(x):
    return x.astype(jnp.bfloat16).astype(jnp.float32)


def _bdot(a, b):
    return jnp.dot(a.astype(jnp.bfloat16), b.astype(jnp.bfloat16),
                   preferred_element_type=jnp.float32)


def reference_forward(t, u, params, dom):
    Tn = dom["T"]
    T = jnp.asarray(Tn.astype(np.int32))
    u_cells = u[:, T]                                                 # (B, C, V, F)
    feats = jnp.concatenate([
        jnp.broadcast_to(t[:, None, :], (B, C, TD)),
        jnp.broadcast_to(jnp.asarray(dom["centers"])[None], (B, C, S)),
        jnp.broadcast_to(jnp.asarray(dom["local_pos"]).reshape(C, V * S)[None], (B, C, V * S)),
        u_cells.reshape(B, C, V * F),
    ], axis=-1)                                                       # (B, C, DIN)

    def mlp(x, w1, b1, w2, b2, w3, b3):
        h = jnp.tanh(_bdot(x, w1) + _rb(b1)[0])   # layer-1 bias is folded as a bf16 row in-kernel
        g = jnp.tanh(_bdot(h, w2) + b2[0])
        return _bdot(g, w3) + b3[0]

    coeff = mlp(feats, params["w1f"], params["b1f"], params["w2f"], params["b2f"],
                params["wcf"], params["bcf"]).reshape(B, C, V, F)
    flow = mlp(feats, params["w1t"], params["b1t"], params["w2t"], params["b2t"],
               params["wft"], params["bft"]).reshape(B, C, F, S)

    # per-(j,s) transport products and free-form products, rounded to bf16 (as in the kernel),
    # then accumulated in f32.
    conv_r = jnp.asarray(dom["conv_data"].transpose(2, 1, 0, 3))      # (C, i, j, S)
    prod_conv = (conv_r[None, :, :, :, :, None]
                 * u_cells[:, :, None, :, None, :]
                 * jnp.transpose(flow, (0, 1, 3, 2))[:, :, None, None, :, :])   # (B,C,i,j,S,F)
    msg = _rb(prod_conv).sum(axis=(3, 4))                             # (B, C, V, F)
    msg = msg + _rb(jnp.asarray(dom["ff_data"]).T[None, :, :, None] * coeff)

    invL = jnp.asarray(dom["inv_lumped"])                             # (NN,)
    contrib = _rb(msg * invL[T][None, :, :, None])                    # (B, C, V, F)
    target = jnp.asarray(Tn.reshape(-1).astype(np.int32))
    received = jax.vmap(lambda m: jax.ops.segment_sum(m, target, num_segments=NN))(
        contrib.reshape(B, C * V, F))
    return received


if __name__ == "__main__":
    dom = build_domain()
    key = jax.random.PRNGKey(0)
    kp, kt, ku = jax.random.split(key, 3)
    params = init_params(kp)

    t = jax.random.normal(kt, (B, TD), jnp.float32)
    u = jax.random.normal(ku, (B, NN, F), jnp.float32)

    consts = prepare(params, dom)                 # one-time: all constants live on device
    du = jax.block_until_ready(with_domain_forward(t, u, consts))
    du_ref = jax.block_until_ready(reference_forward(t, u, params, dom))

    assert du.shape == (B, NN, F)
    du_np = np.asarray(du, dtype=np.float32)
    ref_np = np.asarray(du_ref, dtype=np.float32)
    assert np.all(np.isfinite(du_np))
    assert np.allclose(du_np, ref_np, rtol=1e-2, atol=1e-2), \
        float(np.max(np.abs(du_np - ref_np)))

    print("KERNEL_OK")
</pallas_src>

<mosaic_0001>
module attributes {stable_mosaic.version = 11 : i64} {
  func.func @fen_fused_kernel(%arg0: i32, %arg1: memref<128x128xbf16, #tpu.memory_space<vmem>>, %arg2: memref<128x72xf32, #tpu.memory_space<vmem>>, %arg3: memref<136x200xf32, #tpu.memory_space<vmem>>, %arg4: memref<352x128xbf16, #tpu.memory_space<vmem>>, %arg5: memref<8x128xf32, #tpu.memory_space<vmem>>) attributes {dimension_semantics = [#tpu.dimension_semantics<arbitrary>], iteration_bounds = array<i64: 1>, scalar_prefetch = 0 : i64, scratch_operands = 0 : i64, tpu.core_type = #tpu.core_type<tc>, window_params = [{pipeline_mode = #tpu.pipeline_mode<synchronous>, transform_indices = @transform_0, window_bounds = array<i64: 128, 128>}, {pipeline_mode = #tpu.pipeline_mode<synchronous>, transform_indices = @transform_1, window_bounds = array<i64: 128, 72>}, {pipeline_mode = #tpu.pipeline_mode<synchronous>, transform_indices = @transform_2, window_bounds = array<i64: 136, 200>}, {pipeline_mode = #tpu.pipeline_mode<synchronous>, transform_indices = @transform_3, window_bounds = array<i64: 352, 128>}, {pipeline_mode = #tpu.pipeline_mode<synchronous>, transform_indices = @transform_4, window_bounds = array<i64: 8, 128>}]} {
    %c0 = arith.constant 0 : index
    %c0_0 = arith.constant 0 : index
    %0 = vector.load %arg1[%c0, %c0_0] : memref<128x128xbf16, #tpu.memory_space<vmem>>, vector<128x128xbf16>
    %c0_1 = arith.constant 0 : index
    %c0_2 = arith.constant 0 : index
    %1 = vector.load %arg4[%c0_1, %c0_2] : memref<352x128xbf16, #tpu.memory_space<vmem>>, vector<128x64xbf16>
    %c128 = arith.constant 128 : index
    %c0_3 = arith.constant 0 : index
    %2 = vector.load %arg4[%c128, %c0_3] : memref<352x128xbf16, #tpu.memory_space<vmem>>, vector<64x64xbf16>
    %c192 = arith.constant 192 : index
    %c0_4 = arith.constant 0 : index
    %3 = vector.load %arg4[%c192, %c0_4] : memref<352x128xbf16, #tpu.memory_space<vmem>>, vector<64x72xbf16>
    %c256 = arith.constant 256 : index
    %c0_5 = arith.constant 0 : index
    %4 = vector.load %arg4[%c256, %c0_5] : memref<352x128xbf16, #tpu.memory_space<vmem>>, vector<8x128xbf16>
    %c272 = arith.constant 272 : index
    %c0_6 = arith.constant 0 : index
    %5 = vector.load %arg4[%c272, %c0_6] : memref<352x128xbf16, #tpu.memory_space<vmem>>, vector<72x128xbf16>
    %c0_7 = arith.constant 0 : index
    %c0_8 = arith.constant 0 : index
    %6 = vector.load %arg3[%c0_7, %c0_8] : memref<136x200xf32, #tpu.memory_space<vmem>>, vector<128x128xf32>
    %c0_9 = arith.constant 0 : index
    %c128_10 = arith.constant 128 : index
    %7 = vector.load %arg3[%c0_9, %c128_10] : memref<136x200xf32, #tpu.memory_space<vmem>>, vector<128x72xf32>
    %c128_11 = arith.constant 128 : index
    %c0_12 = arith.constant 0 : index
    %8 = vector.load %arg3[%c128_11, %c0_12] : memref<136x200xf32, #tpu.memory_space<vmem>>, vector<1x64xf32>
    %c128_13 = arith.constant 128 : index
    %c128_14 = arith.constant 128 : index
    %9 = vector.load %arg3[%c128_13, %c128_14] : memref<136x200xf32, #tpu.memory_space<vmem>>, vector<1x72xf32>
    %cst = arith.constant dense<0.000000e+00> : vector<128x64xf32>
    %10 = tpu.matmul %0, %1, %cst {dimension_numbers = #tpu.dot_dimension_numbers<[1], [0], [0], [1], [0, 0, 1, 1], [], []>} : vector<128x128xbf16>, vector<128x64xbf16>, vector<128x64xf32> -> vector<128x64xf32>
    %11 = math.tanh %10 : vector<128x64xf32>
    %12 = arith.truncf %11 : vector<128x64xf32> to vector<128x64xbf16>
    %cst_15 = arith.constant dense<0.000000e+00> : vector<128x64xf32>
    %13 = tpu.matmul %12, %2, %cst_15 {dimension_numbers = #tpu.dot_dimension_numbers<[1], [0], [0], [1], [0, 0, 1, 1], [], []>} : vector<128x64xbf16>, vector<64x64xbf16>, vector<128x64xf32> -> vector<128x64xf32>
    %14 = vector.broadcast %8 : vector<1x64xf32> to vector<128x64xf32>
    %15 = arith.addf %13, %14 : vector<128x64xf32>
    %16 = math.tanh %15 : vector<128x64xf32>
    %17 = arith.truncf %16 : vector<128x64xf32> to vector<128x64xbf16>
    %cst_16 = arith.constant dense<0.000000e+00> : vector<128x72xf32>
    %18 = tpu.matmul %17, %3, %cst_16 {dimension_numbers = #tpu.dot_dimension_numbers<[1], [0], [0], [1], [0, 0, 1, 1], [], []>} : vector<128x64xbf16>, vector<64x72xbf16>, vector<128x72xf32> -> vector<128x72xf32>
    %19 = vector.broadcast %9 : vector<1x72xf32> to vector<128x72xf32>
    %20 = arith.addf %18, %19 : vector<128x72xf32>
    %21 = arith.mulf %20, %7 : vector<128x72xf32>
    %c0_17 = arith.constant 0 : index
    %c0_18 = arith.constant 0 : index
    %22 = vector.load %arg2[%c0_17, %c0_18] : memref<128x72xf32, #tpu.memory_space<vmem>>, vector<128x72xf32>
    %23 = arith.mulf %21, %22 : vector<128x72xf32>
    %24 = arith.truncf %23 : vector<128x72xf32> to vector<128x72xbf16>
    %cst_19 = arith.constant dense<0.000000e+00> : vector<128x128xf32>
    %25 = tpu.matmul %24, %5, %cst_19 {dimension_numbers = #tpu.dot_dimension_numbers<[1], [0], [0], [1], [0, 0, 1, 1], [], []>} : vector<128x72xbf16>, vector<72x128xbf16>, vector<128x128xf32> -> vector<128x128xf32>
    %26 = arith.mulf %25, %6 : vector<128x128xf32>
    %27 = arith.truncf %26 : vector<128x128xf32> to vector<128x128xbf16>
    %cst_20 = arith.constant dense<0.000000e+00> : vector<8x128xf32>
    %28 = tpu.matmul %4, %27, %cst_20 {dimension_numbers = #tpu.dot_dimension_numbers<[1], [0], [0], [1], [0, 0, 1, 1], [], []>} : vector<8x128xbf16>, vector<128x128xbf16>, vector<8x128xf32> -> vector<8x128xf32>
    %c0_21 = arith.constant 0 : index
    %c0_22 = arith.constant 0 : index
    %29 = vector.load %arg5[%c0_21, %c0_22] : memref<8x128xf32, #tpu.memory_space<vmem>>, vector<8x128xf32>
    tpu.vector_store %arg5[%c0_21, %c0_22], %28 {strides = array<i32>} : memref<8x128xf32, #tpu.memory_space<vmem>>, vector<8x128xf32>,
    return
  }
  func.func @transform_0(%arg0: i32) -> (i32, i32) {
    %c0_i32 = arith.constant 0 : i32
    %c0_i32_0 = arith.constant 0 : i32
    %c0_i32_1 = arith.constant 0 : i32
    return %c0_i32, %c0_i32_0 : i32, i32
  }
  func.func @transform_1(%arg0: i32) -> (i32, i32) {
    %c0_i32 = arith.constant 0 : i32
    %c0_i32_0 = arith.constant 0 : i32
    %c0_i32_1 = arith.constant 0 : i32
    return %c0_i32, %c0_i32_0 : i32, i32
  }
  func.func @transform_2(%arg0: i32) -> (i32, i32) {
    %c0_i32 = arith.constant 0 : i32
    %c0_i32_0 = arith.constant 0 : i32
    %c0_i32_1 = arith.constant 0 : i32
    return %c0_i32, %c0_i32_0 : i32, i32
  }
  func.func @transform_3(%arg0: i32) -> (i32, i32) {
    %c0_i32 = arith.constant 0 : i32
    %c0_i32_0 = arith.constant 0 : i32
    %c0_i32_1 = arith.constant 0 : i32
    return %c0_i32, %c0_i32_0 : i32, i32
  }
  func.func @transform_4(%arg0: i32) -> (i32, i32) {
    %c0_i32 = arith.constant 0 : i32
    %c0_i32_0 = arith.constant 0 : i32
    %c0_i32_1 = arith.constant 0 : i32
    return %c0_i32, %c0_i32_0 : i32, i32
  }
}

</mosaic_0001>

<bundles_post_ra>
// kernel: with_domain_forward.1
= control target key start
LH: loop header
LB: loop body
LE: loop exit
PB: predicated region body
PF: predicated region fallthrough
CT: control target
= control target key end

     0   :  { %vm351_vm0 = vcmask 523264   ;;  %vm750_vm1 = vcmask 1043456   ;;  %vm725_vm2 = vcmask 588800   ;;  %vm1258_vm3 = vmmov 0   ;;  %s1581_s3 = inlined_call_operand.vmem [shape: bf16[352,128], index: 3, kind: input, shape index: {}]   ;;  %s1582_s0 = inlined_call_operand.vmem [shape: bf16[128,128], index: 0, kind: input, shape index: {}]   ;;  %s1583_s2 = inlined_call_operand.vmem [shape: f32[136,200], index: 2, kind: input, shape index: {}]   ;;  %s1584_s1 = inlined_call_operand.vmem [shape: f32[128,72], index: 1, kind: input, shape index: {}]   ;;  %s1585_s4 = inlined_call_operand.vmem [shape: f32[8,128], index: 4, kind: output, shape index: {}]  }
   0x1   :  { %v1164_v0 = vld [vmem:[%s1581_s3 + $0x38] sm:$0xff]   ;;  %v1165_v1 = vld [vmem:[%s1581_s3 + $0x30] sm:$0xff]   ;;  %v1166_v2 = vld [vmem:[%s1581_s3 + $0x28] sm:$0xff]  }
   0x2   :  { %1035 = vmatprep.subr.bf16.mxu0 %v1164_v0  ;;  %v1167_v3 = vld [vmem:[%s1581_s3 + $0x20] sm:$0xff]   ;;  %v1168_v5 = vld [vmem:[%s1581_s3 + $0x18] sm:$0xff]   ;;  %v1169_v6 = vld [vmem:[%s1581_s3 + $0x10] sm:$0xff]  }
   0x3   :  { %1036 = vmatpush3.bf16.msra.mxu0 %v1164_v0  ;;  %v1172_v4 = vld [vmem:[%s1582_s0] sm:$0xff]   ;;  %v1170_v7 = vld [vmem:[%s1581_s3 + $0x8] sm:$0xff]   ;;  %v1174_v10 = vld [vmem:[%s1582_s0 + $0x10] sm:$0xff]  }
   0x4   :  { %1037 = vmatprep.subr.bf16.mxu0 %v1165_v1  ;;  %1051 = vmatprep.mubr.bf16.mxu0 %v1172_v4  ;;  %v1171_v8 = vld [vmem:[%s1581_s3] sm:$0xff]   ;;  %v1173_v9 = vld [vmem:[%s1582_s0 + $0x8] sm:$0xff]   ;;  %v1175_v11 = vld [vmem:[%s1582_s0 + $0x18] sm:$0xff]  }
   0x5   :  { %v1176_v12 = vld [vmem:[%s1582_s0 + $0x20] sm:$0xff]   ;;  %v1177_v13 = vld [vmem:[%s1582_s0 + $0x28] sm:$0xff]   ;;  %v1178_v14 = vld [vmem:[%s1582_s0 + $0x30] sm:$0xff]  }
   0x6   :  { %v1179_v15 = vld [vmem:[%s1582_s0 + $0x38] sm:$0xff]   ;;  %v1181_v17 = vld [vmem:[%s1581_s3 + $0x50] sm:$0xff]   ;;  %v1182_v18 = vld [vmem:[%s1581_s3 + $0x48] sm:$0xff]  }
   0x7   :  { %1038 = vmatpush3.bf16.msra.mxu0 %v1165_v1  ;;  %v1180_v16 = vld [vmem:[%s1581_s3 + $0x58] sm:$0xff]   ;;  %v1183_v19 = vld [vmem:[%s1581_s3 + $0x40] sm:$0xff]   ;;  %v1185_v61 = vld [vmem:[%s1581_s3 + $0x70] sm:$0xff]  }
   0x8   :  { %1039 = vmatprep.subr.bf16.mxu0 %v1166_v2  ;;  %1067 = vmatprep.subr.bf16.mxu1 %v1180_v16  ;;  %v1184_v20 = vld [vmem:[%s1581_s3 + $0x78] sm:$0xff]   ;;  %v1186_v62 = vld [vmem:[%s1581_s3 + $0x68] sm:$0xff]   ;;  %v1187_v63 = vld [vmem:[%s1581_s3 + $0x60] sm:$0xff]  }
   0x9   :  { %1068 = vmatpush3.bf16.msra.mxu1 %v1180_v16  ;;  %v1188_v0 = vld [vmem:[%s1581_s3 + $0xa8] ss:$0 sps:$4 sm:$0xff]   ;;  %v1189_v1 = vld [vmem:[%s1581_s3 + $0xa0] sm:$0xff]  }
   0xa   :  { %1069 = vmatprep.subr.bf16.mxu1 %v1181_v17 }
   0xb   :  { %1040 = vmatpush3.bf16.msra.mxu0 %v1166_v2  ;;  %v752_v2 = vsel %vm750_vm1, %v1188_v0, 0 }
   0xc   :  { %1041 = vmatprep.subr.bf16.mxu0 %v1167_v3 }
   0xd   :  { %1070 = vmatpush3.bf16.msra.mxu1 %v1181_v17 }
   0xe   :  { %1071 = vmatprep.subr.bf16.mxu1 %v1182_v18 }
   0xf   :  { %1042 = vmatpush3.bf16.msra.mxu0 %v1167_v3  ;;  %v1190_v3 = vld [vmem:[%s1581_s3 + $0x98] sm:$0xff]  }
  0x10   :  { %1043 = vmatprep.subr.bf16.mxu0 %v1168_v5 }
  0x11   :  { %1072 = vmatpush3.bf16.msra.mxu1 %v1182_v18 }
  0x12   :  { %1073 = vmatprep.subr.bf16.mxu1 %v1183_v19 }
  0x13   :  { %1044 = vmatpush3.bf16.msra.mxu0 %v1168_v5  ;;  %v108_v5 = vld [vmem:[%s1583_s2 + $0x100] ss:$0 sm:$0xff] }
  0x14   :  { %1045 = vmatprep.subr.bf16.mxu0 %v1169_v6 }
  0x15   :  { %1074 = vmatpush3.bf16.msra.mxu1 %v1183_v19 }
  0x16   :  { %1091 = vmatprep.subr.bf16.mxu1 %v1184_v20 }
  0x17   :  { %1046 = vmatpush3.bf16.msra.mxu0 %v1169_v6 }
  0x18   :  { %1047 = vmatprep.subr.bf16.mxu0 %v1170_v7 }
  0x1b   :  { %1048 = vmatpush3.bf16.msra.mxu0 %v1170_v7 }
  0x1c   :  { %1049 = vmatprep.subr.bf16.mxu0 %v1171_v8 }
  0x1f   :  { %1050 = vmatpush3.bf16.msra.mxu0 %v1171_v8 }
  0x20   :  { %1161 = vmatprep.subr.msk.bf16.mxu0 %vm750_vm1, %v1188_v0  ;;  %v1393_v0 = vld [vmem:[%s1583_s2 + $0x108] ss:$0 sm:$0xff] }
  0x22   :  { %1052 = vmatmul.mubr.bf16.vlgmr.msra.gmra.mxu0 %v1173_v9 }
  0x23   :  { %1055 = vmatprep.mubr.bf16.mxu0 %v1174_v10  ;;  %1116 = vmatpush3.bf16.msra.mxu0 %v752_v2 }
  0x24   :  { %1117 = vmatprep.subr.bf16.mxu0 %v1189_v1 }
  0x27   :  { %1118 = vmatpush3.bf16.msra.mxu0 %v1189_v1 }
  0x28   :  { %1119 = vmatprep.subr.bf16.mxu0 %v1190_v3 }
  0x2a   :  { %1056 = vmatmul.mubr.bf16.gmra.mxu0 %v1175_v11 }
  0x2b   :  { %1059 = vmatprep.mubr.bf16.mxu0 %v1176_v12  ;;  %1120 = vmatpush3.bf16.msra.mxu0 %v1190_v3 }
  0x32   :  { %1060 = vmatmul.mubr.bf16.gmra.mxu0 %v1177_v13 }
  0x33   :  { %1063 = vmatprep.mubr.bf16.mxu0 %v1178_v14 }
  0x3a   :  { %1064 = vmatmul.mubr.bf16.gmra.mxu0 %v1179_v15 }
  0xe2   :  { %v1053_v21 = vpop.f32.mrf.mxu0 }
  0xe4   :  { %v240_v22 = vpop.f32.mrf.mxu0 }
  0xe5   :  { %1193 = vtanh.f32 %v240_v22 }
  0xe6   :  { %v1054_v23 = vpop.f32.mrf.mxu0 }
  0xe7   :  { %1195 = vtanh.f32 %v1054_v23 }
  0xe8   :  { %v243_v24 = vpop.f32.mrf.mxu0 }
  0xe9   :  { %1197 = vtanh.f32 %v243_v24 }
  0xea   :  { %1199 = vtanh.f32 %v1053_v21  ;;  %v1057_v25 = vpop.f32.mrf.mxu0 }
  0xec   :  { %v256_v26 = vpop.f32.mrf.mxu0 }
  0xed   :  { %1201 = vtanh.f32 %v256_v26 }
  0xee   :  { %v1058_v27 = vpop.f32.mrf.mxu0 }
  0xef   :  { %1203 = vtanh.f32 %v1058_v27 }
  0xf0   :  { %v259_v28 = vpop.f32.mrf.mxu0 }
  0xf1   :  { %1205 = vtanh.f32 %v259_v28 }
  0xf2   :  { %1207 = vtanh.f32 %v1057_v25  ;;  %v1061_v29 = vpop.f32.mrf.mxu0  ;;  %v1194_v30 = vpop.eup %1193 }
  0xf4   :  { %v272_v31 = vpop.f32.mrf.mxu0  ;;  %v1196_v32 = vpop.eup %1195 }
  0xf5   :  { %1209 = vtanh.f32 %v272_v31 }
  0xf6   :  { %v1198_v33 = vpop.eup %1197  ;;  %v1062_v34 = vpop.f32.mrf.mxu0 }
  0xf7   :  { %v1200_v35 = vpop.eup %1199  ;;  %v319_v36 = vpack.c.bf16 %v1198_v33, %v1194_v30  ;;  %1211 = vtanh.f32 %v1062_v34 }
  0xf8   :  { %v275_v37 = vpop.f32.mrf.mxu0  ;;  %v320_v38 = vpack.c.bf16 %v1196_v32, %v1200_v35 }
  0xf9   :  { %1213 = vtanh.f32 %v275_v37  ;;  %1075 = vmatprep.mubr.msk.bf16.mxu1 %vm351_vm0, %v319_v36 }
  0xfa   :  { %1215 = vtanh.f32 %v1061_v29  ;;  %v1065_v39 = vpop.f32.mrf.mxu0  ;;  %1076 = vmatmul.mubr.msk.bf16.vlgmr.msra.gmra.mxu1 %vm351_vm0, %v320_v38  ;;  %v1202_v40 = vpop.eup %1201 }
  0xfb   :  { %1092 = vmatpush3.bf16.msra.mxu1 %v1184_v20 }
  0xfc   :  { %v288_v41 = vpop.f32.mrf.mxu0  ;;  %v1204_v42 = vpop.eup %1203  ;;  %1093 = vmatprep.subr.bf16.mxu1 %v1185_v61 }
  0xfd   :  { %1217 = vtanh.f32 %v288_v41 }
  0xfe   :  { %v1206_v43 = vpop.eup %1205  ;;  %v1066_v44 = vpop.f32.mrf.mxu0 }
  0xff   :  { %v1208_v45 = vpop.eup %1207  ;;  %v321_v46 = vpack.c.bf16 %v1206_v43, %v1202_v40  ;;  %1219 = vtanh.f32 %v1066_v44  ;;  %1094 = vmatpush3.bf16.msra.mxu1 %v1185_v61  ;;  %v1191_v61 = vld [vmem:[%s1581_s3 + $0x90] sm:$0xff]  }
 0x100   :  { %v291_v47 = vpop.f32.mrf.mxu0  ;;  %v322_v48 = vpack.c.bf16 %v1204_v42, %v1208_v45  ;;  %1095 = vmatprep.subr.bf16.mxu1 %v1186_v62  ;;  %1121 = vmatprep.subr.bf16.mxu0 %v1191_v61 }
 0x101   :  { %1221 = vtanh.f32 %v291_v47  ;;  %1079 = vmatprep.mubr.msk.bf16.mxu1 %vm351_vm0, %v321_v46  ;;  %1122 = vmatpush3.bf16.msra.mxu0 %v1191_v61  ;;  %v101_v61 = vld [vmem:[%s1583_s2 + $0x98] sm:$0xff] }
 0x102   :  { %1223 = vtanh.f32 %v1065_v39  ;;  %1080 = vmatmul.mubr.msk.bf16.gmra.mxu1 %vm351_vm0, %v322_v48  ;;  %v1210_v49 = vpop.eup %1209 }
 0x103   :  { %1096 = vmatpush3.bf16.msra.mxu1 %v1186_v62  ;;  %v1192_v62 = vld [vmem:[%s1581_s3 + $0x88] sm:$0xff]  }
 0x104   :  { %v1212_v50 = vpop.eup %1211  ;;  %1097 = vmatprep.subr.bf16.mxu1 %v1187_v63  ;;  %1123 = vmatprep.subr.bf16.mxu0 %v1192_v62 }
 0x105   :  { %1124 = vmatpush3.bf16.msra.mxu0 %v1192_v62 }
 0x106   :  { %v1214_v51 = vpop.eup %1213 }
 0x107   :  { %v1216_v52 = vpop.eup %1215  ;;  %v323_v53 = vpack.c.bf16 %v1214_v51, %v1210_v49  ;;  %1098 = vmatpush3.bf16.msra.mxu1 %v1187_v63 }
 0x108   :  { %v324_v54 = vpack.c.bf16 %v1212_v50, %v1216_v52 }
 0x109   :  { %1083 = vmatprep.mubr.msk.bf16.mxu1 %vm351_vm0, %v323_v53 }
 0x10a   :  { %1084 = vmatmul.mubr.msk.bf16.gmra.mxu1 %vm351_vm0, %v324_v54  ;;  %v1218_v55 = vpop.eup %1217 }
 0x10c   :  { %v1220_v56 = vpop.eup %1219 }
 0x10e   :  { %v1222_v57 = vpop.eup %1221 }
 0x10f   :  { %v1224_v58 = vpop.eup %1223  ;;  %v325_v59 = vpack.c.bf16 %v1222_v57, %v1218_v55 }
 0x110   :  { %v326_v60 = vpack.c.bf16 %v1220_v56, %v1224_v58 }
 0x111   :  { %1087 = vmatprep.mubr.msk.bf16.mxu1 %vm351_vm0, %v325_v59 }
 0x112   :  { %1088 = vmatmul.mubr.msk.bf16.gmra.mxu1 %vm351_vm0, %v326_v60 }
 0x1ba   :  { %v1077_v4 = vpop.f32.mrf.mxu1 }
 0x1bb   :  { %v419_v10 = vadd.f32 %v1077_v4, %v108_v5  ;;  %v92_v4 = vld [vmem:[%s1583_s2 + $0x8] sm:$0xff] }
 0x1bc   :  { %v410_v6 = vpop.f32.mrf.mxu1 }
 0x1bd   :  { %v411_v7 = vadd.f32 %v410_v6, %v108_v5 }
 0x1be   :  { %v1078_v8 = vpop.f32.mrf.mxu1 }
 0x1bf   :  { %v422_v9 = vadd.f32 %v1078_v8, %v108_v5  ;;  %1225 = vtanh.f32 %v411_v7  ;;  %v94_v7 = vld [vmem:[%s1583_s2 + $0x28] sm:$0xff] }
 0x1c0   :  { %v413_v11 = vpop.f32.mrf.mxu1 }
 0x1c1   :  { %v414_v12 = vadd.f32 %v413_v11, %v108_v5  ;;  %1227 = vtanh.f32 %v422_v9  ;;  %v93_v9 = vld [vmem:[%s1583_s2 + $0x18] sm:$0xff] }
 0x1c2   :  { %v1081_v13 = vpop.f32.mrf.mxu1 }
 0x1c3   :  { %1229 = vtanh.f32 %v414_v12  ;;  %v435_v18 = vadd.f32 %v1081_v13, %v108_v5  ;;  %v661_v13 = vld [vmem:[%s1584_s1 + $0x18] sm:$0xff] }
 0x1c4   :  { %1231 = vtanh.f32 %v419_v10  ;;  %v426_v14 = vpop.f32.mrf.mxu1 }
 0x1c5   :  { %v427_v15 = vadd.f32 %v426_v14, %v108_v5 }
 0x1c6   :  { %v1082_v16 = vpop.f32.mrf.mxu1 }
 0x1c7   :  { %v438_v17 = vadd.f32 %v1082_v16, %v108_v5  ;;  %1233 = vtanh.f32 %v427_v15  ;;  %v658_v16 = vld [vmem:[%s1584_s1] sm:$0xff] }
 0x1c8   :  { %v429_v19 = vpop.f32.mrf.mxu1 }
 0x1c9   :  { %v430_v20 = vadd.f32 %v429_v19, %v108_v5  ;;  %1235 = vtanh.f32 %v438_v17  ;;  %v659_v17 = vld [vmem:[%s1584_s1 + $0x8] sm:$0xff]  ;;  %v660_v19 = vld [vmem:[%s1584_s1 + $0x10] sm:$0xff] }
 0x1ca   :  { %v1085_v21 = vpop.f32.mrf.mxu1 }
 0x1cb   :  { %1237 = vtanh.f32 %v430_v20  ;;  %v451_v29 = vadd.f32 %v1085_v21, %v108_v5 }
 0x1cc   :  { %1239 = vtanh.f32 %v435_v18  ;;  %v442_v22 = vpop.f32.mrf.mxu1  ;;  %v1226_v24 = vpop.eup %1225 }
 0x1cd   :  { %v443_v23 = vadd.f32 %v442_v22, %v108_v5 }
 0x1ce   :  { %v1086_v25 = vpop.f32.mrf.mxu1  ;;  %v1228_v26 = vpop.eup %1227 }
 0x1cf   :  { %v454_v27 = vadd.f32 %v1086_v25, %v108_v5  ;;  %1241 = vtanh.f32 %v443_v23 }
 0x1d0   :  { %v1230_v28 = vpop.eup %1229  ;;  %v445_v30 = vpop.f32.mrf.mxu1 }
 0x1d1   :  { %v1232_v31 = vpop.eup %1231  ;;  %v446_v32 = vadd.f32 %v445_v30, %v108_v5  ;;  %v489_v33 = vpack.c.bf16 %v1230_v28, %v1226_v24  ;;  %1243 = vtanh.f32 %v454_v27  ;;  %v96_v28 = vld [vmem:[%s1583_s2 + $0x48] sm:$0xff] }
 0x1d2   :  { %v490_v34 = vpack.c.bf16 %v1228_v26, %v1232_v31  ;;  %v1089_v35 = vpop.f32.mrf.mxu1 }
 0x1d3   :  { %1245 = vtanh.f32 %v446_v32  ;;  %1099 = vmatprep.mubr.msk.bf16.mxu1 %vm351_vm0, %v489_v33  ;;  %v467_v43 = vadd.f32 %v1089_v35, %v108_v5  ;;  %v98_v32 = vld [vmem:[%s1583_s2 + $0x68] sm:$0xff]  ;;  %v97_v35 = vld [vmem:[%s1583_s2 + $0x58] sm:$0xff] }
 0x1d4   :  { %1247 = vtanh.f32 %v451_v29  ;;  %v458_v36 = vpop.f32.mrf.mxu1  ;;  %1100 = vmatmul.mubr.msk.bf16.vlgmr.msra.gmra.mxu1 %vm351_vm0, %v490_v34  ;;  %v1234_v38 = vpop.eup %1233  ;;  %v99_v29 = vld [vmem:[%s1583_s2 + $0x78] sm:$0xff] }
 0x1d5   :  { %v459_v37 = vadd.f32 %v458_v36, %v108_v5 }
 0x1d6   :  { %v1090_v39 = vpop.f32.mrf.mxu1  ;;  %v1236_v40 = vpop.eup %1235 }
 0x1d7   :  { %v470_v41 = vadd.f32 %v1090_v39, %v108_v5  ;;  %1249 = vtanh.f32 %v459_v37  ;;  %v665_v39 = vld [vmem:[%s1584_s1 + $0x38] sm:$0xff] }
 0x1d8   :  { %v1238_v42 = vpop.eup %1237  ;;  %v461_v44 = vpop.f32.mrf.mxu1 }
 0x1d9   :  { %v1240_v45 = vpop.eup %1239  ;;  %v462_v46 = vadd.f32 %v461_v44, %v108_v5  ;;  %v491_v47 = vpack.c.bf16 %v1238_v42, %v1234_v38  ;;  %1251 = vtanh.f32 %v470_v41  ;;  %v95_v5 = vld [vmem:[%s1583_s2 + $0x38] sm:$0xff]  ;;  %v662_v42 = vld [vmem:[%s1584_s1 + $0x20] sm:$0xff] }
 0x1da   :  { %v492_v48 = vpack.c.bf16 %v1236_v40, %v1240_v45  ;;  %v664_v45 = vld [vmem:[%s1584_s1 + $0x30] sm:$0xff] }
 0x1db   :  { %1253 = vtanh.f32 %v462_v46  ;;  %1103 = vmatprep.mubr.msk.bf16.mxu1 %vm351_vm0, %v491_v47 }
 0x1dc   :  { %1255 = vtanh.f32 %v467_v43  ;;  %1104 = vmatmul.mubr.msk.bf16.gmra.mxu1 %vm351_vm0, %v492_v48  ;;  %v1242_v49 = vpop.eup %1241  ;;  %v663_v43 = vld [vmem:[%s1584_s1 + $0x28] sm:$0xff] }
 0x1de   :  { %v1244_v50 = vpop.eup %1243 }
 0x1e0   :  { %v1246_v51 = vpop.eup %1245 }
 0x1e1   :  { %v1248_v52 = vpop.eup %1247  ;;  %v493_v53 = vpack.c.bf16 %v1246_v51, %v1242_v49 }
 0x1e2   :  { %v494_v54 = vpack.c.bf16 %v1244_v50, %v1248_v52 }
 0x1e3   :  { %1107 = vmatprep.mubr.msk.bf16.mxu1 %vm351_vm0, %v493_v53 }
 0x1e4   :  { %1108 = vmatmul.mubr.msk.bf16.gmra.mxu1 %vm351_vm0, %v494_v54  ;;  %v1250_v55 = vpop.eup %1249  ;;  %v100_v54 = vld [vmem:[%s1583_s2 + $0x88] sm:$0xff] }
 0x1e6   :  { %v1252_v56 = vpop.eup %1251 }
 0x1e8   :  { %v1254_v57 = vpop.eup %1253 }
 0x1e9   :  { %v1256_v58 = vpop.eup %1255  ;;  %v495_v59 = vpack.c.bf16 %v1254_v57, %v1250_v55  ;;  %v103_v55 = vld [vmem:[%s1583_s2 + $0xb8] sm:$0xff] }
 0x1ea   :  { %v496_v60 = vpack.c.bf16 %v1252_v56, %v1256_v58  ;;  %v102_v58 = vld [vmem:[%s1583_s2 + $0xa8] sm:$0xff] }
 0x1eb   :  { %1111 = vmatprep.mubr.msk.bf16.mxu1 %vm351_vm0, %v495_v59 }
 0x1ec   :  { %1112 = vmatmul.mubr.msk.bf16.gmra.mxu1 %vm351_vm0, %v496_v60 }
 0x294   :  { %v1101_v63 = vpop.f32.mrf.mxu1 }
 0x295   :  { %v588_v3 = vadd.f32 %v1101_v63, %v1393_v0 }
 0x296   :  { %v579_v1 = vpop.f32.mrf.mxu1 }
 0x297   :  { %v580_v2 = vadd.f32 %v579_v1, %v1393_v0  ;;  %v644_v15 = vmul.f32 %v588_v3, %v94_v7 }
 0x298   :  { %v1102_v6 = vpop.f32.mrf.mxu1 }
 0x299   :  { %v591_v8 = vadd.f32 %v1102_v6, %v1393_v0  ;;  %v642_v11 = vmul.f32 %v580_v2, %v92_v4  ;;  %v676_v26 = vmul.f32 %v660_v19, %v644_v15  ;;  %v669_v2 = vld [vmem:[%s1584_s1 + $0x58] sm:$0xff]  ;;  %v667_v6 = vld [vmem:[%s1584_s1 + $0x48] sm:$0xff] }
 0x29a   :  { %v582_v10 = vpop.f32.mrf.mxu1 }
 0x29b   :  { %v645_v12 = vmul.f32 %v591_v8, %v95_v5  ;;  %v583_v14 = vadd.f32 %v582_v10, %v1393_v0  ;;  %v674_v23 = vmul.f32 %v658_v16, %v642_v11  ;;  %v666_v5 = vld [vmem:[%s1584_s1 + $0x40] sm:$0xff]  ;;  %v668_v8 = vld [vmem:[%s1584_s1 + $0x50] sm:$0xff] }
 0x29c   :  { %v1105_v18 = vpop.f32.mrf.mxu1 }
 0x29d   :  { %v643_v20 = vmul.f32 %v583_v14, %v93_v9  ;;  %v677_v21 = vmul.f32 %v661_v13, %v645_v12  ;;  %v604_v27 = vadd.f32 %v1105_v18, %v1393_v0  ;;  %v107_v18 = vld [vmem:[%s1583_s2 + $0xf8] sm:$0xff] }
 0x29e   :  { %v595_v22 = vpop.f32.mrf.mxu1 }
 0x29f   :  { %v675_v24 = vmul.f32 %v659_v17, %v643_v20  ;;  %v596_v25 = vadd.f32 %v595_v22, %v1393_v0  ;;  %v691_v34 = vpack.c.bf16 %v677_v21, %v676_v26  ;;  %v648_v41 = vmul.f32 %v604_v27, %v98_v32  ;;  %v104_v17 = vld [vmem:[%s1583_s2 + $0xc8] sm:$0xff] }
 0x2a0   :  { %v1106_v30 = vpop.f32.mrf.mxu1  ;;  %v106_v21 = vld [vmem:[%s1583_s2 + $0xe8] sm:$0xff] }
 0x2a1   :  { %v690_v31 = vpack.c.bf16 %v675_v24, %v674_v23  ;;  %v607_v33 = vadd.f32 %v1106_v30, %v1393_v0  ;;  %v646_v37 = vmul.f32 %v596_v25, %v96_v28  ;;  %v680_v52 = vmul.f32 %v664_v45, %v648_v41  ;;  %v105_v24 = vld [vmem:[%s1583_s2 + $0xd8] sm:$0xff]  ;;  %v671_v32 = vld [vmem:[%s1584_s1 + $0x68] sm:$0xff] }
 0x2a2   :  { %v598_v36 = vpop.f32.mrf.mxu1  ;;  %v673_v28 = vld [vmem:[%s1584_s1 + $0x78] sm:$0xff] }
 0x2a3   :  { %v649_v38 = vmul.f32 %v607_v33, %v99_v29  ;;  %v599_v40 = vadd.f32 %v598_v36, %v1393_v0  ;;  %1125 = vmatprep.mubr.msk.bf16.mxu0 %vm725_vm2, %v690_v31  ;;  %v678_v49 = vmul.f32 %v662_v42, %v646_v37  ;;  %v670_v31 = vld [vmem:[%s1584_s1 + $0x60] sm:$0xff]  ;;  %v672_v33 = vld [vmem:[%s1584_s1 + $0x70] sm:$0xff] }
 0x2a4   :  { %v1109_v44 = vpop.f32.mrf.mxu1  ;;  %1126 = vmatmul.mubr.msk.bf16.vlgmr.msra.gmra.mxu0 %vm725_vm2, %v691_v34 }
 0x2a5   :  { %v647_v46 = vmul.f32 %v599_v40, %v97_v35  ;;  %v681_v47 = vmul.f32 %v665_v39, %v649_v38  ;;  %v620_v53 = vadd.f32 %v1109_v44, %v1393_v0  ;;  %v1257_v40 = vmov 0.0  }
 0x2a6   :  { %v611_v48 = vpop.f32.mrf.mxu1  ;;  %1141 = vmatprep.subr.bf16.mxu1 %v1257_v40  ;;  %1157 = vmatprep.mubr.msk.bf16.mxu1 %vm1258_vm3, %v1257_v40 }
 0x2a7   :  { %v679_v50 = vmul.f32 %v663_v43, %v647_v46  ;;  %v612_v51 = vadd.f32 %v611_v48, %v1393_v0  ;;  %v693_v60 = vpack.c.bf16 %v681_v47, %v680_v52  ;;  %v652_v4 = vmul.f32 %v620_v53, %v102_v58  ;;  %v89_v58 = vld [vmem:[%s1583_s2 + $0xd0] sm:$0xff] }
 0x2a8   :  { %v1110_v56 = vpop.f32.mrf.mxu1 }
 0x2a9   :  { %v692_v57 = vpack.c.bf16 %v679_v50, %v678_v49  ;;  %v623_v59 = vadd.f32 %v1110_v56, %v1393_v0  ;;  %v650_v63 = vmul.f32 %v612_v51, %v100_v54  ;;  %v684_v15 = vmul.f32 %v668_v8, %v652_v4  ;;  %v90_v54 = vld [vmem:[%s1583_s2 + $0xe0] sm:$0xff]  ;;  %v91_v56 = vld [vmem:[%s1583_s2 + $0xf0] sm:$0xff] }
 0x2aa   :  { %v614_v62 = vpop.f32.mrf.mxu1  ;;  %v86_v4 = vld [vmem:[%s1583_s2 + $0xa0] sm:$0xff] }
 0x2ab   :  { %v653_v1 = vmul.f32 %v623_v59, %v103_v55  ;;  %v615_v3 = vadd.f32 %v614_v62, %v1393_v0  ;;  %1129 = vmatprep.mubr.msk.bf16.mxu0 %vm725_vm2, %v692_v57  ;;  %v682_v12 = vmul.f32 %v666_v5, %v650_v63 }
 0x2ac   :  { %v1113_v7 = vpop.f32.mrf.mxu1  ;;  %1130 = vmatmul.mubr.msk.bf16.gmra.mxu0 %vm725_vm2, %v693_v60 }
 0x2ad   :  { %v651_v9 = vmul.f32 %v615_v3, %v101_v61  ;;  %v685_v10 = vmul.f32 %v669_v2, %v653_v1  ;;  %v636_v16 = vadd.f32 %v1113_v7, %v1393_v0  ;;  %v88_v61 = vld [vmem:[%s1583_s2 + $0xc0] sm:$0xff]  ;;  %v87_v2 = vld [vmem:[%s1583_s2 + $0xb0] sm:$0xff] }
 0x2ae   :  { %v627_v11 = vpop.f32.mrf.mxu1  ;;  %v85_v7 = vld [vmem:[%s1583_s2 + $0x90] sm:$0xff] }
 0x2af   :  { %v683_v13 = vmul.f32 %v667_v6, %v651_v9  ;;  %v628_v14 = vadd.f32 %v627_v11, %v1393_v0  ;;  %v695_v23 = vpack.c.bf16 %v685_v10, %v684_v15  ;;  %v656_v30 = vmul.f32 %v636_v16, %v106_v21  ;;  %v84_v9 = vld [vmem:[%s1583_s2 + $0x80] sm:$0xff] }
 0x2b0   :  { %v1114_v19 = vpop.f32.mrf.mxu1 }
 0x2b1   :  { %v694_v20 = vpack.c.bf16 %v683_v13, %v682_v12  ;;  %v639_v22 = vadd.f32 %v1114_v19, %v1393_v0  ;;  %v654_v26 = vmul.f32 %v628_v14, %v104_v17  ;;  %v688_v37 = vmul.f32 %v672_v33, %v656_v30  ;;  %v83_v12 = vld [vmem:[%s1583_s2 + $0x70] sm:$0xff]  ;;  %v82_v14 = vld [vmem:[%s1583_s2 + $0x60] sm:$0xff] }
 0x2b2   :  { %v630_v25 = vpop.f32.mrf.mxu1  ;;  %v81_v17 = vld [vmem:[%s1583_s2 + $0x50] sm:$0xff]  ;;  %v80_v19 = vld [vmem:[%s1583_s2 + $0x40] sm:$0xff] }
 0x2b3   :  { %v657_v27 = vmul.f32 %v639_v22, %v107_v18  ;;  %v631_v29 = vadd.f32 %v630_v25, %v1393_v0  ;;  %1133 = vmatprep.mubr.msk.bf16.mxu0 %vm725_vm2, %v694_v20  ;;  %v686_v0 = vmul.f32 %v670_v31, %v654_v26  ;;  %v79_v22 = vld [vmem:[%s1583_s2 + $0x30] sm:$0xff] }
 0x2b4   :  { %1134 = vmatmul.mubr.msk.bf16.gmra.mxu0 %vm725_vm2, %v695_v23 }
 0x2b5   :  { %v655_v34 = vmul.f32 %v631_v29, %v105_v24  ;;  %v689_v35 = vmul.f32 %v673_v28, %v657_v27  ;;  %v78_v24 = vld [vmem:[%s1583_s2 + $0x20] sm:$0xff]  ;;  %v77_v27 = vld [vmem:[%s1583_s2 + $0x10] sm:$0xff] }
 0x2b6   :  { %v76_v29 = vld [vmem:[%s1583_s2] sm:$0xff] }
 0x2b7   :  { %v687_v36 = vmul.f32 %v671_v32, %v655_v34  ;;  %v697_v39 = vpack.c.bf16 %v689_v35, %v688_v37  ;;  %v66_v34 = vld [vmem:[%s1581_s3 + $0x80] sm:$0xf] }
 0x2b9   :  { %v696_v38 = vpack.c.bf16 %v687_v36, %v686_v0 }
 0x2bb   :  { %1137 = vmatprep.mubr.msk.bf16.mxu0 %vm725_vm2, %v696_v38 }
 0x2bc   :  { %1138 = vmatmul.mubr.msk.bf16.gmra.mxu0 %vm725_vm2, %v697_v39 }
 0x364   :  { %v1127_v41 = vpop.f32.mrf.mxu0 }
 0x365   :  { %v853_v28 = vmul.f32 %v1127_v41, %v78_v24 }
 0x366   :  { %v1517_v42 = vpop.f32.mrf.mxu0 }
 0x367   :  { %v851_v32 = vmul.f32 %v1517_v42, %v76_v29 }
 0x368   :  { %v1128_v43 = vpop.f32.mrf.mxu0 }
 0x369   :  { %v854_v25 = vmul.f32 %v1128_v43, %v79_v22 }
 0x36a   :  { %v791_v44 = vpop.f32.mrf.mxu0 }
 0x36b   :  { %v868_v30 = vpack.c.bf16 %v854_v25, %v853_v28  ;;  %v852_v31 = vmul.f32 %v791_v44, %v77_v27 }
 0x36c   :  { %v1131_v45 = vpop.f32.mrf.mxu0 }
 0x36d   :  { %v857_v18 = vmul.f32 %v1131_v45, %v82_v14  ;;  %v867_v33 = vpack.c.bf16 %v852_v31, %v851_v32 }
 0x36e   :  { %v804_v46 = vpop.f32.mrf.mxu0 }
 0x36f   :  { %v855_v23 = vmul.f32 %v804_v46, %v80_v19 }
 0x370   :  { %v1132_v47 = vpop.f32.mrf.mxu0 }
 0x371   :  { %v858_v15 = vmul.f32 %v1132_v47, %v83_v12 }
 0x372   :  { %v807_v48 = vpop.f32.mrf.mxu0 }
 0x373   :  { %v870_v20 = vpack.c.bf16 %v858_v15, %v857_v18  ;;  %v856_v21 = vmul.f32 %v807_v48, %v81_v17 }
 0x374   :  { %v1135_v49 = vpop.f32.mrf.mxu0 }
 0x375   :  { %v861_v8 = vmul.f32 %v1135_v49, %v86_v4  ;;  %v869_v26 = vpack.c.bf16 %v856_v21, %v855_v23 }
 0x376   :  { %v820_v50 = vpop.f32.mrf.mxu0 }
 0x377   :  { %v859_v13 = vmul.f32 %v820_v50, %v84_v9 }
 0x378   :  { %v1136_v51 = vpop.f32.mrf.mxu0 }
 0x379   :  { %v862_v5 = vmul.f32 %v1136_v51, %v87_v2 }
 0x37a   :  { %v823_v52 = vpop.f32.mrf.mxu0 }
 0x37b   :  { %v872_v10 = vpack.c.bf16 %v862_v5, %v861_v8  ;;  %v860_v11 = vmul.f32 %v823_v52, %v85_v7 }
 0x37c   :  { %v1139_v53 = vpop.f32.mrf.mxu0 }
 0x37d   :  { %v865_v59 = vmul.f32 %v1139_v53, %v90_v54  ;;  %v871_v16 = vpack.c.bf16 %v860_v11, %v859_v13 }
 0x37e   :  { %v836_v55 = vpop.f32.mrf.mxu0 }
 0x37f   :  { %v863_v3 = vmul.f32 %v836_v55, %v88_v61 }
 0x380   :  { %v1140_v57 = vpop.f32.mrf.mxu0 }
 0x381   :  { %v866_v60 = vmul.f32 %v1140_v57, %v91_v56 }
 0x382   :  { %v839_v62 = vpop.f32.mrf.mxu0 }
 0x383   :  { %v874_v63 = vpack.c.bf16 %v866_v60, %v865_v59  ;;  %v864_v1 = vmul.f32 %v839_v62, %v89_v58 }
 0x385   :  { %1142 = vmatpush3.bf16.msra.mxu1 %v874_v63  ;;  %v873_v6 = vpack.c.bf16 %v864_v1, %v863_v3 }
 0x386   :  { %1143 = vmatprep.subr.bf16.mxu1 %v1257_v40 }
 0x389   :  { %1144 = vmatpush3.bf16.msra.mxu1 %v873_v6 }
 0x38a   :  { %1145 = vmatprep.subr.bf16.mxu1 %v1257_v40 }
 0x38d   :  { %1146 = vmatpush3.bf16.msra.mxu1 %v872_v10 }
 0x38e   :  { %1147 = vmatprep.subr.bf16.mxu1 %v1257_v40 }
 0x391   :  { %1148 = vmatpush3.bf16.msra.mxu1 %v871_v16 }
 0x392   :  { %1149 = vmatprep.subr.bf16.mxu1 %v1257_v40 }
 0x395   :  { %1150 = vmatpush3.bf16.msra.mxu1 %v870_v20 }
 0x396   :  { %1151 = vmatprep.subr.bf16.mxu1 %v1257_v40 }
 0x399   :  { %1152 = vmatpush3.bf16.msra.mxu1 %v869_v26 }
 0x39a   :  { %1153 = vmatprep.subr.bf16.mxu1 %v1257_v40 }
 0x39d   :  { %1154 = vmatpush3.bf16.msra.mxu1 %v868_v30 }
 0x39e   :  { %1155 = vmatprep.subr.bf16.mxu1 %v1257_v40 }
 0x3a1   :  { %1156 = vmatpush3.bf16.msra.mxu1 %v867_v33 }
 0x3a4   :  { %1158 = vmatmul.mubr.bf16.vlgmr.msra.gmra.mxu1 %v66_v34 }
 0x464   :  { %v909_v35 = vpop.f32.mrf.mxu1 }
 0x465   :  { %915 = vst [vmem:[%s1585_s4] sm:$0xff] %v909_v35 }
 0x466   :  { %v1159_v0 = vpop.f32.mrf.mxu1 }
 0x468   :  { %v912_v36 = vpop.f32.mrf.mxu1 }
 0x46a   :  { %v1160_v37 = vpop.f32.mrf.mxu1 }

</bundles_post_ra>
